<compile_context>
chip_gen: v5e
topology: v5e:2x2
jax: 0.10.0
libtpu: 0.0.40
codegen_flags: <defaults>
</compile_context>

<pallas_src>
import functools

import jax
import jax.numpy as jnp
from jax.experimental import pallas as pl
from jax.experimental.pallas import tpu as pltpu


_NUM_CORES = 2                       # megacore split (v7x); harmless on 1-TC chips
_VMEM_BUDGET = 28 * 1024 * 1024      # double-buffered logits+targets + f32 temps
_VMEM_LIMIT = 48 * 1024 * 1024       # < 64 MiB physical (v7x), << 128 MiB (v5e/v6e)


def _focal_ce_partial_kernel(x_ref, t_ref, out_ref, *,
                             tile_n, n_rows, n_full_tiles, tiles_per_core,
                             needs_mask_path):
    core = pl.program_id(0)
    j = pl.program_id(1)
    i_global = core * tiles_per_core + j          # nominal tile id (may be padding)

    # Per-core running CE sum lives in the resident (1,1,1) output block.
    @pl.when(j == 0)
    def _():
        out_ref[...] = jnp.zeros_like(out_ref)

    x_nat = x_ref[...]                            # (tile_n, C) logits, native dtype
    x = x_nat.astype(jnp.float32)                 # widened in-register on the VPU
    t = t_ref[...]                                # (tile_n, 1) int32 class indices

    # Numerically stable log-sum-exp per row.
    m = jnp.max(x, axis=-1, keepdims=True)                               # (tile_n, 1)
    lse = jnp.log(jnp.sum(jnp.exp(x - m), axis=-1, keepdims=True)) + m   # (tile_n, 1)

    # Target-class logit via one-hot select (no dynamic gather on TPU); select on
    # the native dtype, widen afterwards.
    col_ids = jax.lax.broadcasted_iota(jnp.int32, x_nat.shape, 1)        # (tile_n, C)
    tgt_logit = jnp.sum(jnp.where(col_ids == t, x_nat, 0).astype(jnp.float32),
                        axis=-1, keepdims=True)                          # (tile_n, 1)

    per_row = lse - tgt_logit                                            # (tile_n, 1)

    def _acc(rows):
        s = jnp.sum(rows, axis=0, keepdims=True)                         # (1, 1)
        out_ref[...] = out_ref[...] + s.reshape(out_ref.shape)

    if not needs_mask_path:
        _acc(per_row)                            # every tile fully in range (static)
    else:
        in_range = i_global < n_full_tiles

        @pl.when(in_range)
        def _():
            _acc(per_row)

        @pl.when(jnp.logical_not(in_range))
        def _():
            # Ragged / padding tile: drop rows past the true batch size.
            row_ids = (i_global * tile_n
                       + jax.lax.broadcasted_iota(jnp.int32, (tile_n, 1), 0))
            _acc(jnp.where(row_ids < n_rows, per_row, 0.0))


def _choose_tile_n(c, itemsize, sublane):
    """Largest sublane-aligned row tile that fits the VMEM budget.

    Per-row cost: double-buffered logits block (lane-padded C) + double-buffered
    (tile_n, 1) int32 targets block (lane-padded to 128 lanes => 512 B/row per
    buffer) + ~3 f32 in-kernel temporaries of the tile.
    """
    padded_c = pl.cdiv(c, 128) * 128
    per_row = 2 * (padded_c * itemsize + 128 * 4) + 3 * padded_c * 4
    t = _VMEM_BUDGET // per_row
    return max(sublane, (t // sublane) * sublane)


def focal_loss(inputs, targets, *, alpha=1.0, gamma=2.0, tile_n=None):
    """inputs: (N, C) float logits; targets: (N,) int class indices -> scalar f32."""
    n, c = inputs.shape
    itemsize = jnp.dtype(inputs.dtype).itemsize
    sublane = max(8, 32 // itemsize)              # 8 f32 / 16 bf16 / 32 int8-fp8
    t2d = targets.astype(jnp.int32).reshape(n, 1)

    if tile_n is None:
        tile_n = _choose_tile_n(c, itemsize, sublane)
    if tile_n >= n:
        tile_n = n                                # single full-extent block (legal)
    else:
        tile_n = max(sublane, (tile_n // sublane) * sublane)

    num_tiles = pl.cdiv(n, tile_n)                # real tiles
    tiles_per_core = pl.cdiv(num_tiles, _NUM_CORES)
    total_tiles = _NUM_CORES * tiles_per_core     # includes per-core padding tiles
    n_full_tiles = n // tile_n                    # tiles fully inside the batch
    needs_mask_path = total_tiles * tile_n != n   # static: any ragged/padding tile?

    def block_idx(core, j):
        # Clamp so padding tiles re-read the last real block (their contribution
        # is masked to zero inside the kernel) — keeps every DMA in bounds.
        return (jnp.minimum(core * tiles_per_core + j, num_tiles - 1), 0)

    kernel = functools.partial(
        _focal_ce_partial_kernel,
        tile_n=tile_n, n_rows=n, n_full_tiles=n_full_tiles,
        tiles_per_core=tiles_per_core, needs_mask_path=needs_mask_path)

    partial_sums = pl.pallas_call(
        kernel,
        out_shape=jax.ShapeDtypeStruct((_NUM_CORES, 1, 1), jnp.float32),
        grid=(_NUM_CORES, tiles_per_core),
        in_specs=[
            # Logits streamed tile-by-tile in their native dtype.
            pl.BlockSpec((tile_n, c), block_idx),
            # Targets tile (lane-padded in VMEM; footprint included in the budget).
            pl.BlockSpec((tile_n, 1), block_idx),
        ],
        # One resident partial-CE-sum block per core (full last-two-dims => legal).
        out_specs=pl.BlockSpec((1, 1, 1), lambda core, j: (core, 0, 0)),
        compiler_params=pltpu.CompilerParams(
            dimension_semantics=("parallel", "arbitrary"),
            vmem_limit_bytes=_VMEM_LIMIT),
        cost_estimate=pl.CostEstimate(
            flops=5 * n * c,
            transcendentals=n * c,
            bytes_accessed=n * c * itemsize + n * 4 + _NUM_CORES * 4),
    )(inputs, t2d)

    # Scalar epilogue: cross-core reduce, mean, focal transform.
    ce = jnp.sum(partial_sums) / jnp.float32(n)
    ce = jnp.maximum(ce, 0.0)                     # guard tiny negative cancellation
    pt = jnp.exp(-ce)
    base = jnp.maximum(1.0 - pt, 0.0)
    g = float(gamma)
    focal_w = base ** int(g) if g.is_integer() else base ** g
    return jnp.float32(alpha) * focal_w * ce


if __name__ == "__main__":
    key = jax.random.PRNGKey(0)
    k_logits, k_tgt = jax.random.split(key)

    # Small multi-class problem: N=20, C=16.
    N, C = 20, 16
    logits = jax.random.normal(k_logits, (N, C), dtype=jnp.float32)
    targets = jax.random.randint(k_tgt, (N,), 0, C, dtype=jnp.int32)

    # Pure-JAX reference (same math as torch CrossEntropyLoss + focal transform).
    logp = jax.nn.log_softmax(logits, axis=-1)
    ce_ref = -jnp.mean(jnp.take_along_axis(logp, targets[:, None], axis=1))
    pt_ref = jnp.exp(-ce_ref)
    focal_ref = 1.0 * (1.0 - pt_ref) ** 2.0 * ce_ref

    # tile_n=8 exercises the multi-tile grid (real tiles 0..2), the ragged last
    # tile and the masked megacore padding tile (grid = (2, 2)).
    loss_tiled = jax.block_until_ready(
        focal_loss(logits, targets, alpha=1.0, gamma=2.0, tile_n=8))
    # Auto tile: single full-extent block on core 0, fully-masked tile on core 1.
    loss_auto = jax.block_until_ready(
        focal_loss(logits, targets, alpha=1.0, gamma=2.0))

    assert jnp.allclose(loss_tiled, focal_ref, rtol=1e-5, atol=1e-5), (loss_tiled, focal_ref)
    assert jnp.allclose(loss_auto, focal_ref, rtol=1e-5, atol=1e-5), (loss_auto, focal_ref)

    print("KERNEL_OK")
</pallas_src>

<mosaic_0001>
module attributes {stable_mosaic.version = 11 : i64} {
  func.func @_focal_ce_partial_kernel(%arg0: i32, %arg1: i32, %arg2: memref<8x16xf32, #tpu.memory_space<vmem>>, %arg3: memref<8x1xi32, #tpu.memory_space<vmem>>, %arg4: memref<1x1x1xf32, #tpu.memory_space<vmem>>) attributes {dimension_semantics = [#tpu.dimension_semantics<parallel>, #tpu.dimension_semantics<arbitrary>], iteration_bounds = array<i64: 2, 2>, scalar_prefetch = 0 : i64, scratch_operands = 0 : i64, tpu.core_type = #tpu.core_type<tc>, window_params = [{transform_indices = @transform_0, window_bounds = array<i64: 8, 16>}, {transform_indices = @transform_1, window_bounds = array<i64: 8, 1>}, {transform_indices = @transform_2, window_bounds = array<i64: 1, 1, 1>}]} {
    %c2_i32 = arith.constant 2 : i32
    %0 = arith.muli %arg0, %c2_i32 : i32
    %1 = arith.addi %0, %arg1 : i32
    %c0_i32 = arith.constant 0 : i32
    %2 = arith.cmpi eq, %arg1, %c0_i32 : i32
    %3 = arith.extui %2 : i1 to i32
    %c0_i32_0 = arith.constant 0 : i32
    %4 = arith.cmpi ne, %3, %c0_i32_0 : i32
    scf.if %4 {
      %cst_10 = arith.constant 0.000000e+00 : f32
      %31 = vector.broadcast %cst_10 : f32 to vector<1x1x1xf32>
      %c0_11 = arith.constant 0 : index
      %c0_12 = arith.constant 0 : index
      %c0_13 = arith.constant 0 : index
      %32 = vector.load %arg4[%c0_11, %c0_12, %c0_13] : memref<1x1x1xf32, #tpu.memory_space<vmem>>, vector<1x1x1xf32>
      tpu.vector_store %arg4[%c0_11, %c0_12, %c0_13], %31 {strides = array<i32>} : memref<1x1x1xf32, #tpu.memory_space<vmem>>, vector<1x1x1xf32>,
    } else {
    }
    %c0 = arith.constant 0 : index
    %c0_1 = arith.constant 0 : index
    %5 = vector.load %arg2[%c0, %c0_1] : memref<8x16xf32, #tpu.memory_space<vmem>>, vector<8x16xf32>
    %c0_2 = arith.constant 0 : index
    %c0_3 = arith.constant 0 : index
    %6 = vector.load %arg3[%c0_2, %c0_3] : memref<8x1xi32, #tpu.memory_space<vmem>>, vector<8x1xi32>
    %cst = arith.constant dense<0xFF800000> : vector<8xf32>
    %7 = vector.multi_reduction <maximumf>, %5, %cst [1] : vector<8x16xf32> to vector<8xf32>
    %8 = vector.shape_cast %7 : vector<8xf32> to vector<8x1xf32>
    %9 = vector.broadcast %8 : vector<8x1xf32> to vector<8x16xf32>
    %10 = arith.subf %5, %9 : vector<8x16xf32>
    %11 = math.exp %10 : vector<8x16xf32>
    %cst_4 = arith.constant dense<0.000000e+00> : vector<8xf32>
    %12 = vector.multi_reduction <add>, %11, %cst_4 [1] : vector<8x16xf32> to vector<8xf32>
    %13 = vector.shape_cast %12 : vector<8xf32> to vector<8x1xf32>
    %14 = math.log %13 : vector<8x1xf32>
    %15 = arith.addf %14, %8 : vector<8x1xf32>
    %16 = tpu.iota {dimensions = array<i32: 1>} : vector<8x16xi32>
    %17 = vector.broadcast %6 : vector<8x1xi32> to vector<8x16xi32>
    %18 = arith.cmpi eq, %16, %17 : vector<8x16xi32>
    %c0_i32_5 = arith.constant 0 : i32
    %19 = arith.sitofp %c0_i32_5 : i32 to f32
    %20 = vector.broadcast %19 : f32 to vector<8x16xf32>
    %21 = arith.select %18, %5, %20 : vector<8x16xi1>, vector<8x16xf32>
    %cst_6 = arith.constant dense<0.000000e+00> : vector<8xf32>
    %22 = vector.multi_reduction <add>, %21, %cst_6 [1] : vector<8x16xf32> to vector<8xf32>
    %23 = vector.shape_cast %22 : vector<8xf32> to vector<8x1xf32>
    %24 = arith.subf %15, %23 : vector<8x1xf32>
    %c2_i32_7 = arith.constant 2 : i32
    %25 = arith.cmpi slt, %1, %c2_i32_7 : i32
    %26 = arith.extui %25 : i1 to i32
    %c0_i32_8 = arith.constant 0 : i32
    %27 = arith.cmpi ne, %26, %c0_i32_8 : i32
    scf.if %27 {
      %cst_10 = arith.constant dense<0.000000e+00> : vector<1xf32>
      %31 = vector.multi_reduction <add>, %24, %cst_10 [0] : vector<8x1xf32> to vector<1xf32>
      %32 = vector.shape_cast %31 : vector<1xf32> to vector<1x1xf32>
      %c0_11 = arith.constant 0 : index
      %c0_12 = arith.constant 0 : index
      %c0_13 = arith.constant 0 : index
      %33 = vector.load %arg4[%c0_11, %c0_12, %c0_13] : memref<1x1x1xf32, #tpu.memory_space<vmem>>, vector<1x1x1xf32>
      %34 = vector.shape_cast %32 : vector<1x1xf32> to vector<1x1x1xf32>
      %35 = arith.addf %33, %34 : vector<1x1x1xf32>
      %c0_14 = arith.constant 0 : index
      %c0_15 = arith.constant 0 : index
      %c0_16 = arith.constant 0 : index
      %36 = vector.load %arg4[%c0_14, %c0_15, %c0_16] : memref<1x1x1xf32, #tpu.memory_space<vmem>>, vector<1x1x1xf32>
      tpu.vector_store %arg4[%c0_14, %c0_15, %c0_16], %35 {strides = array<i32>} : memref<1x1x1xf32, #tpu.memory_space<vmem>>, vector<1x1x1xf32>,
    } else {
    }
    %true = arith.constant true
    %28 = arith.xori %25, %true : i1
    %29 = arith.extui %28 : i1 to i32
    %c0_i32_9 = arith.constant 0 : i32
    %30 = arith.cmpi ne, %29, %c0_i32_9 : i32
    scf.if %30 {
      %c8_i32 = arith.constant 8 : i32
      %31 = arith.muli %1, %c8_i32 : i32
      %32 = tpu.iota {dimensions = array<i32: 0>} : vector<8x1xi32>
      %33 = vector.broadcast %31 : i32 to vector<8x1xi32>
      %34 = arith.addi %33, %32 : vector<8x1xi32>
      %c20_i32 = arith.constant 20 : i32
      %35 = vector.broadcast %c20_i32 : i32 to vector<8x1xi32>
      %36 = arith.cmpi slt, %34, %35 : vector<8x1xi32>
      %cst_10 = arith.constant 0.000000e+00 : f32
      %37 = vector.broadcast %cst_10 : f32 to vector<8x1xf32>
      %38 = arith.select %36, %24, %37 : vector<8x1xi1>, vector<8x1xf32>
      %cst_11 = arith.constant dense<0.000000e+00> : vector<1xf32>
      %39 = vector.multi_reduction <add>, %38, %cst_11 [0] : vector<8x1xf32> to vector<1xf32>
      %40 = vector.shape_cast %39 : vector<1xf32> to vector<1x1xf32>
      %c0_12 = arith.constant 0 : index
      %c0_13 = arith.constant 0 : index
      %c0_14 = arith.constant 0 : index
      %41 = vector.load %arg4[%c0_12, %c0_13, %c0_14] : memref<1x1x1xf32, #tpu.memory_space<vmem>>, vector<1x1x1xf32>
      %42 = vector.shape_cast %40 : vector<1x1xf32> to vector<1x1x1xf32>
      %43 = arith.addf %41, %42 : vector<1x1x1xf32>
      %c0_15 = arith.constant 0 : index
      %c0_16 = arith.constant 0 : index
      %c0_17 = arith.constant 0 : index
      %44 = vector.load %arg4[%c0_15, %c0_16, %c0_17] : memref<1x1x1xf32, #tpu.memory_space<vmem>>, vector<1x1x1xf32>
      tpu.vector_store %arg4[%c0_15, %c0_16, %c0_17], %43 {strides = array<i32>} : memref<1x1x1xf32, #tpu.memory_space<vmem>>, vector<1x1x1xf32>,
    } else {
    }
    return
  }
  func.func @transform_0(%arg0: i32, %arg1: i32) -> (i32, i32) {
    %c2_i32 = arith.constant 2 : i32
    %0 = arith.muli %arg0, %c2_i32 : i32
    %1 = arith.addi %0, %arg1 : i32
    %c2_i32_0 = arith.constant 2 : i32
    %2 = arith.minsi %1, %c2_i32_0 : i32
    %c0_i32 = arith.constant 0 : i32
    %c0_i32_1 = arith.constant 0 : i32
    return %2, %c0_i32 : i32, i32
  }
  func.func @transform_1(%arg0: i32, %arg1: i32) -> (i32, i32) {
    %c2_i32 = arith.constant 2 : i32
    %0 = arith.muli %arg0, %c2_i32 : i32
    %1 = arith.addi %0, %arg1 : i32
    %c2_i32_0 = arith.constant 2 : i32
    %2 = arith.minsi %1, %c2_i32_0 : i32
    %c0_i32 = arith.constant 0 : i32
    %c0_i32_1 = arith.constant 0 : i32
    return %2, %c0_i32 : i32, i32
  }
  func.func @transform_2(%arg0: i32, %arg1: i32) -> (i32, i32, i32) {
    %c0_i32 = arith.constant 0 : i32
    %c0_i32_0 = arith.constant 0 : i32
    %c0_i32_1 = arith.constant 0 : i32
    return %arg0, %c0_i32, %c0_i32_0 : i32, i32, i32
  }
}

</mosaic_0001>

<bundles_post_ra>
// kernel: tpu_custom_call.1
= control target key start
LH: loop header
LB: loop body
LE: loop exit
PB: predicated region body
PF: predicated region fallthrough
CT: control target
= control target key end

     0   :  { %s491_s9 = smov 0   ;;  %s493_s10 = smov 0   ;;  %s567_s0 = inlined_call_operand.vmem [shape: f32[20,16], index: 0, kind: input, shape index: {}]   ;;  %s568_s1 = inlined_call_operand.vmem [shape: s32[20,1], index: 1, kind: input, shape index: {}]   ;;  %s569_s2 = inlined_call_operand.vmem [shape: f32[2,1,1], index: 2, kind: output, shape index: {}]  }
   0x1   :  { %s495_s11 = smov 0   ;;  %s497_s12 = smov 0  }
   0x2   :  { %s499_s13 = smov 0  }
   0x3 LB: > { %s21_s14 = sadd.s32 1, %s464_s11  ;;  %s24_s15 = sadd.s32 1, %s468_s12  ;;  %s472_s13 = sphi %s499_s13, %s12_s13   ;;  %s468_s12 = sphi %s497_s12, %s573_s12   ;;  %s464_s11 = sphi %s495_s11, %s572_s11   ;;  %s460_s10 = sphi %s493_s10, %s571_s10   ;;  %s456_s9 = sphi %s491_s9, %s570_s9  }
   0x4   : > { %p22_p0 = scmp.ge.s32.totalorder %s21_s14, 2  ;;  %p369_p1 = scmp.ge.s32.totalorder %s472_s13, 1 }
   0x5   : > { %p164_p2 = scmp.lt.s32.totalorder %s472_s13, 5 }
   0x6   : > { %s575_s14 = smov (%p22_p0, %s21_s14), 0  ;;  %s577_s15 = smov (!%p22_p0, %s24_s15), %s468_s12 }
   0x7   : > { %p165_p3 = pnand %p369_p1, %p164_p2  ;;  %p26_p4 = scmp.ge.s32.totalorder %s577_s15, 2 }
   0x8   : > { %s370_s16 = sshll.u32 (!%p165_p3), %s460_s10, 1  ;;  %p219_p5 = scmp.lt.s32.totalorder (!%p165_p3), %s460_s10, 1 }
   0x9   : > { %s579_s15 = smov (%p26_p4, %s577_s15), 0  ;;  %168 = sbr.rel (%p165_p3) target bundleno = 323 (0x143), region = 28 }
   0xa   : > { %s521_s17 = sadd.s32 (!%p165_p3), %s456_s9, %s370_s16  ;;  %p381_p7 = scmp.ne.s32.totalorder (!%p165_p3), %s456_s9, 0 }
   0xb   : > { %p197_p6 = scmp.lt.s32.totalorder (!%p165_p3), %s521_s17, 2 }
   0xe   : > { %s581_s10 = smov (!%p219_p5, %s460_s10), 1 }
   0xf   : > { %s198_s18 = scalar_select %p197_p6, %s521_s17, 2 }
  0x10   : > { %s530_s21 = scalar_lea.vmem %s569_s2, %s581_s10  ;;  %227 = sbr.rel (%p381_p7) target bundleno = 23 (0x17), region = 32 }
  0x11   : > { %s583_s18 = smov (!%p197_p6, %s198_s18), 2 }
  0x12   : > { %s374_s22 = sshll.u32 %s583_s18, 3 }
  0x13   : > { %s202_s25 = scalar_lea.vmem %s567_s0, %s374_s22  ;;  %s214_s28 = scalar_lea.vmem %s568_s1, %s374_s22 }
  0x15   : > { %vm228_vm0 = vcmask 0   ;;  %v474_v0 = vmov 0.0  }
  0x16   : > { %229 = vst.msk [vmem:[%s530_s21] sm:$0x1] %vm228_vm0, %v474_v0 }
  0x17 PF: > { %v230_v1 = vld [vmem:[%s202_s25] sm:$0xff]  ;;  %vm232_vm1 = vcmask 130048   ;;  %v475_v3 = vmov 0   ;;  %v245_v10 = vlaneseq  ;;  %p382_p8 = scmp.ge.s32.totalorder %s521_s17, 2 }
  0x18   : > { %v233_v2 = vsel %vm232_vm1, %v230_v1, -inf  ;;  %429 = vset.pattern.permute.xlu0 %v475_v3  ;;  %v231_v4 = vld [vmem:[%s214_s28] sm:$0xff] }
  0x19   : > { %234 = vmax.xlane.f32.xlu0 %v233_v2  ;;  %v246_v11 = vand.u32 127, %v245_v10 }
  0x2d   : > { %248 = vperm.xlu0 %429, %v231_v4  }
  0x8c   : > { %v235_v5 = vpop.xlane.xlu0 %234 }
  0x8d   : > { %v236_v6 = vsub.f32 %v230_v1, %v235_v5 }
  0x8f   : > { %v237_v7 = vmul.f32 1.442695, %v236_v6 }
  0x91   : > { %430 = vpow2.f32 %v237_v7 }
  0x97   : > { %v431_v8 = vpop.eup %430 }
  0x98   : > { %v239_v9 = vsel %vm232_vm1, %v431_v8, 0.0 }
  0x99   : > { %240 = vadd.xlane.f32.xlu1 %v239_v9 }
  0x9f   : > { %v249_v12 = vpop.permute.xlu0 %248 }
  0xa0   : > { %vm250_vm2 = vcmp.eq.s32.totalorder %v246_v11, %v249_v12 }
  0xa1   : > { %v251_v13 = vsel %vm250_vm2, %v230_v1, 0.0 }
  0xa2   : > { %v252_v14 = vsel %vm232_vm1, %v251_v13, 0.0 }
  0xa3   : > { %253 = vadd.xlane.f32.xlu1 %v252_v14 }
 0x10c   : > { %v241_v15 = vpop.xlane.xlu1 %240 }
 0x10d   : > { %432 = vlog2.f32 %v241_v15 }
 0x113   : > { %v433_v16 = vpop.eup %432 }
 0x114   : > { %v243_v17 = vmul.f32 0.6931472, %v433_v16  ;;  %259 = sbr.rel (%p382_p8) target bundleno = 297 (0x129), region = 36 }
 0x116   : > { %v244_v18 = vadd.f32 %v243_v17, %v235_v5  ;;  %v254_v19 = vpop.xlane.xlu1 %253 }
 0x118   : > { %v255_v20 = vsub.f32 %v244_v18, %v254_v19 }
 0x119   : > { %v266_v26 = vld [vmem:[%s530_s21] sm:$0x1]  ;;  %vm268_vm3 = vcmask 0  }
 0x11a   : > { %v260_v21 = vrot.slane %v255_v20, 4 }
 0x11c   : > { %v261_v22 = vadd.f32 %v260_v21, %v255_v20 }
 0x11e   : > { %v262_v23 = vrot.slane %v261_v22, 2 }
 0x120   : > { %v263_v24 = vadd.f32 %v262_v23, %v261_v22 }
 0x122   : > { %v264_v25 = vrot.slane %v263_v24, 1 }
 0x124   : > { %v265_v27 = vadd.f32 %v264_v25, %v263_v24 }
 0x126   : > { %v267_v28 = vadd.f32 %v266_v26, %v265_v27 }
 0x128   : > { %269 = vst.msk [vmem:[%s530_s21] sm:$0x1] %vm268_vm3, %v267_v28 }
 0x129 PF: > { %273 = sbr.rel (%p197_p6) target bundleno = 323 (0x143), region = 40  ;;  %s384_s29 = sshll.u32 (!%p197_p6), %s521_s17, 3 }
 0x12e   : > { %v276_v29 = vshrl.u32 %v245_v10, 7  ;;  %v277_v30 = vstv %s384_s29  ;;  %vm289_vm5 = vcmask 0  }
 0x12f   : > { %v287_v38 = vld [vmem:[%s530_s21] sm:$0x1] }
 0x130   : > { %v278_v31 = vadd.s32 %v277_v30, %v276_v29 }
 0x132   : > { %vm279_vm4 = vcmp.lt.s32.totalorder %v278_v31, 20 }
 0x133   : > { %v280_v32 = vsel %vm279_vm4, %v255_v20, 0.0 }
 0x134   : > { %v281_v33 = vrot.slane %v280_v32, 4 }
 0x136   : > { %v282_v34 = vadd.f32 %v281_v33, %v280_v32 }
 0x138   : > { %v283_v35 = vrot.slane %v282_v34, 2 }
 0x13a   : > { %v284_v36 = vadd.f32 %v283_v35, %v282_v34 }
 0x13c   : > { %v285_v37 = vrot.slane %v284_v36, 1 }
 0x13e   : > { %v286_v39 = vadd.f32 %v285_v37, %v284_v36 }
 0x140   : > { %v288_v40 = vadd.f32 %v287_v38, %v286_v39 }
 0x142   : > { %290 = vst.msk [vmem:[%s530_s21] sm:$0x1] %vm289_vm5, %v288_v40 }
 0x143 PF: > { %s12_s13 = sadd.s32 1, %s472_s13   ;;  %s570_s9 = smov %s464_s11 }
 0x144   : > { %p9_p9 = scmp.ge.s32.totalorder %s12_s13, 6   ;;  %s571_s10 = smov %s468_s12 }
 0x145   : > { %s572_s11 = smov %s575_s14  ;;  %s573_s12 = smov %s579_s15 }
 0x146   :  { %11 = sbr.rel (!%p9_p9) target bundleno = 3 (0x3), region = 73 }

</bundles_post_ra>
